<compile_context>
chip_gen: v7x
topology: tpu7x:2x2x1
jax: 0.10.0
libtpu: 0.0.40
codegen_flags: <defaults>
</compile_context>

<pallas_src>
import jax
import jax.numpy as jnp
from jax.experimental import pallas as pl
from jax.experimental.pallas import tpu as pltpu


# --------------------------------------------------------------------------- #
# Helpers
# --------------------------------------------------------------------------- #
def _round_up(x: int, m: int) -> int:
    return ((x + m - 1) // m) * m


def _vmem_capacity_bytes() -> int:
    """Physical VMEM of the local TPU; conservative fallback if unavailable."""
    try:
        info = pltpu.get_tpu_info()
        cap = int(getattr(info, "vmem_capacity_bytes", 0) or 0)
        if cap > 0:
            return cap
    except Exception:
        pass
    return 64 * 1024 * 1024  # v7x physical size — safe lower bound


_VMEM_PHYSICAL = _vmem_capacity_bytes()
_K_TILE_MAX = 512          # contraction tile upper bound (multiple of 128)
_MXU_DTYPE = jnp.bfloat16  # MXU-native input dtype; accumulation stays f32


def _choose_row_tile(m_rows: int, tk: int, h_out: int,
                     x_bytes: int, w_bytes: int, budget_bytes: int) -> int:
    """Largest multiple-of-8 row tile whose double-buffered tiles fit the
    VMEM budget, capped so the M axis yields at least two row tiles."""
    # Resident per grid step (x2 pipeline buffers): weight K-tile + bias.
    fixed = 2 * tk * h_out * w_bytes + 2 * h_out * 4
    # Per output row (x2 buffers): x K-tile + f32 output tile.
    per_row = 2 * tk * x_bytes + 2 * h_out * 4
    avail = max(budget_bytes - fixed, 8 * per_row)
    tm = int(max(8, min(avail // per_row, 4096)))
    # >= 2 row tiles so the "parallel" M axis can be split across TensorCores.
    two_tile_cap = _round_up(max(1, -(-m_rows // 2)), 8)
    tm = min(tm, two_tile_cap)
    return max(8, (tm // 8) * 8)


# --------------------------------------------------------------------------- #
# Kernels
# --------------------------------------------------------------------------- #
def _linear_head_kernel(x_ref, w_ref, b_ref, o_ref):
    """Single-K path: o = x @ w + b for one row tile (K = full hidden dim)."""
    o_ref[...] = (
        jnp.dot(x_ref[...].astype(_MXU_DTYPE),
                w_ref[...].astype(_MXU_DTYPE),
                preferred_element_type=jnp.float32)
        + b_ref[...]
    ).astype(o_ref.dtype)


def _linear_head_acc_kernel(x_ref, w_ref, b_ref, o_ref):
    """Multi-K path: accumulate directly into the resident output block."""
    k = pl.program_id(1)

    @pl.when(k == 0)
    def _():
        o_ref[...] = jnp.broadcast_to(b_ref[...], o_ref.shape)

    o_ref[...] += jnp.dot(x_ref[...].astype(_MXU_DTYPE),
                          w_ref[...].astype(_MXU_DTYPE),
                          preferred_element_type=jnp.float32)


# --------------------------------------------------------------------------- #
# Wrapper
# --------------------------------------------------------------------------- #
@jax.jit
def time_series_forward(x, w, b):
    """Forward pass: y = x @ w + b applied per timestep.

    x: (B, S, H)     float32
    w: (H, H_out)    float32
    b: (H_out,)      float32
    returns: (B, S, H_out) float32
    """
    B, S, H = x.shape
    H_out = w.shape[1]
    M = B * S

    x2d = x.reshape(M, H)
    b2d = b.reshape(1, H_out).astype(jnp.float32)

    # Generation-aware VMEM budget, communicated to the compiler.
    budget = (_VMEM_PHYSICAL * 5) // 8
    vmem_limit = int(max(32 << 20,
                         min(_VMEM_PHYSICAL - (4 << 20), budget + (8 << 20))))

    if H <= _K_TILE_MAX:
        # Single-K: K block is the full hidden dim -> no padding, no extra pass.
        TK, gk = H, 1
        x_in, w_in = x2d, w
    else:
        H_pad = _round_up(H, 128)
        TK = 128
        for cand in (512, 384, 256, 128):
            if H_pad % cand == 0:
                TK = cand
                break
        gk = H_pad // TK
        if H_pad != H:
            # Padding genuinely required -> fuse it with the bf16 cast.
            x_in = jnp.pad(x2d, ((0, 0), (0, H_pad - H))).astype(_MXU_DTYPE)
            w_in = jnp.pad(w, ((0, H_pad - H), (0, 0))).astype(_MXU_DTYPE)
        else:
            x_in, w_in = x2d, w

    x_bytes = x_in.dtype.itemsize
    w_bytes = w_in.dtype.itemsize
    TM = _choose_row_tile(M, TK, H_out, x_bytes, w_bytes, budget)
    gm = pl.cdiv(M, TM)

    cost = pl.CostEstimate(
        flops=2 * M * H * H_out,
        transcendentals=0,
        bytes_accessed=(M * TK * gk * x_bytes      # x
                        + TK * gk * H_out * w_bytes  # w
                        + H_out * 4                  # bias
                        + M * H_out * 4),            # out
    )

    if gk == 1:
        out2d = pl.pallas_call(
            _linear_head_kernel,
            out_shape=jax.ShapeDtypeStruct((M, H_out), jnp.float32),
            grid=(gm,),
            in_specs=[
                pl.BlockSpec((TM, TK), lambda i: (i, 0)),        # x row tile
                pl.BlockSpec((TK, H_out), lambda i: (0, 0)),     # weight (resident)
                pl.BlockSpec((1, H_out), lambda i: (0, 0)),      # bias (resident)
            ],
            out_specs=pl.BlockSpec((TM, H_out), lambda i: (i, 0)),
            compiler_params=pltpu.CompilerParams(
                dimension_semantics=("parallel",),
                vmem_limit_bytes=vmem_limit),
            cost_estimate=cost,
        )(x_in, w_in, b2d)
    else:
        out2d = pl.pallas_call(
            _linear_head_acc_kernel,
            out_shape=jax.ShapeDtypeStruct((M, H_out), jnp.float32),
            grid=(gm, gk),
            in_specs=[
                pl.BlockSpec((TM, TK), lambda i, k: (i, k)),     # x row/K tile
                pl.BlockSpec((TK, H_out), lambda i, k: (k, 0)),  # weight K tile
                pl.BlockSpec((1, H_out), lambda i, k: (0, 0)),   # bias (resident)
            ],
            out_specs=pl.BlockSpec((TM, H_out), lambda i, k: (i, 0)),
            compiler_params=pltpu.CompilerParams(
                dimension_semantics=("parallel", "arbitrary"),
                vmem_limit_bytes=vmem_limit),
            cost_estimate=cost,
        )(x_in, w_in, b2d)

    return out2d.reshape(B, S, H_out)


# TODO(synk): get_default_parameters / configure_optimizers /
# get_parameter_ranges are host-side training configuration (abstract in the
# reference module) and have no Pallas kernel equivalent.


# --------------------------------------------------------------------------- #
# Self-test
# --------------------------------------------------------------------------- #
if __name__ == "__main__":
    key = jax.random.PRNGKey(0)

    def ref_forward(x, w, b):
        # Same bf16-input / f32-accumulate numerics as the kernel.
        return jnp.einsum(
            "bsh,ho->bso",
            x.astype(jnp.bfloat16), w.astype(jnp.bfloat16),
            preferred_element_type=jnp.float32,
        ) + b

    cases = [
        (2, 8, 32, 32),    # single-K fast path (typical small head)
        (3, 5, 32, 24),    # M not a multiple of the row tile, narrow head
        (2, 8, 640, 32),   # multi-K accumulate path
    ]

    for (B, S, H, H_out) in cases:
        kx, kw, kb, key = jax.random.split(key, 4)
        x = jax.random.normal(kx, (B, S, H), dtype=jnp.float32)
        # Deterministic parameter init (synthetic weights, not a checkpoint).
        w = jax.random.normal(kw, (H, H_out), dtype=jnp.float32) / jnp.sqrt(H)
        b = jax.random.normal(kb, (H_out,), dtype=jnp.float32) * 0.01

        y = time_series_forward(x, w, b)
        jax.block_until_ready(y)

        y_ref = ref_forward(x, w, b)
        assert y.shape == (B, S, H_out)
        max_err = float(jnp.max(jnp.abs(y - y_ref)))
        assert jnp.allclose(y, y_ref, atol=3e-2, rtol=3e-2), max_err

    print("KERNEL_OK")
</pallas_src>

<mosaic_0001>
module attributes {stable_mosaic.version = 11 : i64} {
  func.func @_linear_head_kernel(%arg0: i32, %arg1: memref<8x32xf32, #tpu.memory_space<vmem>>, %arg2: memref<32x32xf32, #tpu.memory_space<vmem>>, %arg3: memref<1x32xf32, #tpu.memory_space<vmem>>, %arg4: memref<8x32xf32, #tpu.memory_space<vmem>>) attributes {dimension_semantics = [#tpu.dimension_semantics<parallel>], iteration_bounds = array<i64: 2>, scalar_prefetch = 0 : i64, scratch_operands = 0 : i64, tpu.core_type = #tpu.core_type<tc>, window_params = [{transform_indices = @transform_0, window_bounds = array<i64: 8, 32>}, {pipeline_mode = #tpu.pipeline_mode<synchronous>, transform_indices = @transform_1, window_bounds = array<i64: 32, 32>}, {pipeline_mode = #tpu.pipeline_mode<synchronous>, transform_indices = @transform_2, window_bounds = array<i64: 1, 32>}, {transform_indices = @transform_3, window_bounds = array<i64: 8, 32>}]} {
    %c0 = arith.constant 0 : index
    %c0_0 = arith.constant 0 : index
    %0 = vector.load %arg1[%c0, %c0_0] : memref<8x32xf32, #tpu.memory_space<vmem>>, vector<8x32xf32>
    %1 = arith.truncf %0 : vector<8x32xf32> to vector<8x32xbf16>
    %c0_1 = arith.constant 0 : index
    %c0_2 = arith.constant 0 : index
    %2 = vector.load %arg2[%c0_1, %c0_2] : memref<32x32xf32, #tpu.memory_space<vmem>>, vector<32x32xf32>
    %3 = arith.truncf %2 : vector<32x32xf32> to vector<32x32xbf16>
    %cst = arith.constant dense<0.000000e+00> : vector<8x32xf32>
    %4 = tpu.matmul %1, %3, %cst {dimension_numbers = #tpu.dot_dimension_numbers<[1], [0], [0], [1], [0, 0, 1, 1], [], []>} : vector<8x32xbf16>, vector<32x32xbf16>, vector<8x32xf32> -> vector<8x32xf32>
    %c0_3 = arith.constant 0 : index
    %c0_4 = arith.constant 0 : index
    %5 = vector.load %arg3[%c0_3, %c0_4] : memref<1x32xf32, #tpu.memory_space<vmem>>, vector<1x32xf32>
    %6 = vector.broadcast %5 : vector<1x32xf32> to vector<8x32xf32>
    %7 = arith.addf %4, %6 : vector<8x32xf32>
    %c0_5 = arith.constant 0 : index
    %c0_6 = arith.constant 0 : index
    %8 = vector.load %arg4[%c0_5, %c0_6] : memref<8x32xf32, #tpu.memory_space<vmem>>, vector<8x32xf32>
    tpu.vector_store %arg4[%c0_5, %c0_6], %7 {strides = array<i32>} : memref<8x32xf32, #tpu.memory_space<vmem>>, vector<8x32xf32>,
    return
  }
  func.func @transform_0(%arg0: i32) -> (i32, i32) {
    %c0_i32 = arith.constant 0 : i32
    %c0_i32_0 = arith.constant 0 : i32
    return %arg0, %c0_i32 : i32, i32
  }
  func.func @transform_1(%arg0: i32) -> (i32, i32) {
    %c0_i32 = arith.constant 0 : i32
    %c0_i32_0 = arith.constant 0 : i32
    %c0_i32_1 = arith.constant 0 : i32
    return %c0_i32, %c0_i32_0 : i32, i32
  }
  func.func @transform_2(%arg0: i32) -> (i32, i32) {
    %c0_i32 = arith.constant 0 : i32
    %c0_i32_0 = arith.constant 0 : i32
    %c0_i32_1 = arith.constant 0 : i32
    return %c0_i32, %c0_i32_0 : i32, i32
  }
  func.func @transform_3(%arg0: i32) -> (i32, i32) {
    %c0_i32 = arith.constant 0 : i32
    %c0_i32_0 = arith.constant 0 : i32
    return %arg0, %c0_i32 : i32, i32
  }
}

</mosaic_0001>

<bundles_post_ra>
// kernel: time_series_forward.1
= control target key start
LH: loop header
LB: loop body
LE: loop exit
PB: predicated region body
PF: predicated region fallthrough
CT: control target
= control target key end

     0   :  { %8 = vsyncpa [#allocation3], 0  ;;  %s800_s0 = inlined_call_operand.hbm [shape: f32[16,32], index: 0, kind: input, shape index: {}]   ;;  %s801_s1 = inlined_call_operand.hbm [shape: f32[32,32], index: 1, kind: input, shape index: {}]   ;;  %s802_s2 = inlined_call_operand.vmem [shape: f32[1,32], index: 2, kind: input, shape index: {}]   ;;  %s803_s3 = inlined_call_operand.hbm [shape: f32[16,32], index: 3, kind: output, shape index: {}]  }
   0x1   :  { %10 = vsyncpa [#allocation3 + $0x1], 0 }
   0x2   :  { %11 = vsyncpa [#allocation6], 0 }
   0x3   :  { %12 = vsyncpa [#allocation4], 0 }
   0x4   :  { %14 = vsyncpa [#allocation4 + $0x1], 0  ;;  %s601_s12 = smov 0   ;;  %s603_s13 = smov 0  }
   0x5   :  { %s605_s14 = smov 0   ;;  %s607_s15 = smov 0  }
   0x6 LB: > { %s622_s16 = sadd.s32 4294967295, %s572_s15   ;;  %s356_s17 = sadd.s32 4294967294, %s572_s15   ;;  %s572_s15 = sphi %s607_s15, %s823_s15   ;;  %s568_s14 = sphi %s605_s14, %s822_s14   ;;  %s564_s13 = sphi %s603_s13, %s821_s13   ;;  %s560_s12 = sphi %s601_s12, %s820_s12  }
   0x7   : > { %p40_p0 = scmp.ne.s32.totalorder %s564_s13, %s560_s12  ;;  %p804_p1 = scmp.eq.s32.totalorder %s622_s16, 0 }
   0x8   : > { %p112_p3 = scmp.eq.s32.totalorder %s356_s17, 1  ;;  %p357_p5 = scmp.ge.s32.totalorder %s572_s15, 1 }
   0x9   : > { %p631_p4 = por %p804_p1, %p40_p0  ;;  %p119_p7 = scmp.lt.s32.totalorder %s572_s15, 3 }
   0xa   : > { %p636_p6 = por %p112_p3, %p40_p0  ;;  %s574_s21 = smov [#allocation5]  }
   0xb   : > { %s807_s18 = scalar_select %p631_p4, 1, 0 }
   0xc   : > { %s808_s19 = scalar_select %p636_p6, 1, 0 }
   0xd   : > { %p641_p8 = pnand %p357_p5, %p119_p7  ;;  %s131_s22 = sshll.u32 %s574_s21, 4  ;;  %s645_s22 = int_to_ptr.vmem [resolvable:$true] %s131_s22 }
   0xe   : > { %s657_s24 = sadd.s32 1, %s572_s15   ;;  %s27_s25 = sadd.s32 1, %s568_s14 }
   0xf   : > { %s809_s20 = scalar_select %p641_p8, 1, 0 }
  0x10   : > { %p391_p9 = pneg %p641_p8  ;;  %s24_s26 = ssub.s32 %s572_s15, %s657_s24 }
  0x11   : > { %s444_s29 = scalar_lea.hbm %s801_s1, 512 }
  0x12   : > { %p652_p11 = pnand %p391_p9, %p804_p1  ;;  %p445_p12 = scmp.ne.s32.totalorder %s801_s1, %s444_s29 }
  0x13   : > { %p451_p5 = scmp.lt.u32.totalorder %s444_s29, %s801_s1 }
  0x14   : > { %p446_p13 = pneg %p652_p11 }
  0x16   : > { %p447_p0 = pnand %p446_p13, %p445_p12 }
  0x18   : > { %p448_p3 = pneg %p447_p0 }
  0x1a   : > { %p453_p7 = pnand %p451_p5, %p448_p3 }
  0x1c   : > { %456 = shalt.err (!%p453_p7)
}
  0x1d   : > { %s457_s7 = scalar_lea.vmem %s645_s22, 512  ;;  %p465_p2 = scmp.lt.s32.totalorder %s645_s22, %s645_s22 }
  0x1e   : > { %p458_p9 = scmp.ne.s32.totalorder %s645_s22, %s457_s7  ;;  %p466_p6 = scmp.lt.s32.totalorder %s457_s7, %s457_s7 }
  0x20   : > { %p460_p10 = pnand %p458_p9, %p446_p13  ;;  %p467_p4 = por %p466_p6, %p465_p2 }
  0x22   : > { %p461_p1 = pneg %p460_p10 }
  0x24   : > { %p468_p8 = pnand %p467_p4, %p461_p1 }
  0x26   : > { %471 = shalt.err (!%p468_p8)
}
  0x27   : > { %s575_s8 = smov 128   ;;  %s576_s9 = smov 8  }
  0x28   : > { %394 = dma.hbm_to_vmem [thread:$0]  (!%p652_p11), %s801_s1, 512, %s645_s22, [#allocation6], %s575_s8, %s575_s8, %s576_s9  }
  0x29   : > { %p25_p2 = scmp.eq.s32.totalorder %s24_s26, 0  ;;  %p34_p1 = scmp.ne.s32.totalorder %s568_s14, %s564_s13 }
  0x2a   : > { %p35_p4 = scmp.eq.s32.totalorder %s572_s15, 0  ;;  %p404_p6 = scmp.lt.s32.totalorder %s572_s15, 2 }
  0x2b   : > { %s688_s17 = scalar_select %p25_p2, %s568_s14, %s27_s25  }
  0x2c   : > { %p36_p8 = por %p35_p4, %p34_p1  ;;  %p811_p10 = scmp.eq.s32.totalorder %s622_s16, 1 }
  0x2d   : > { %s148_s27 = sand.u32 1, %s568_s14   ;;  %s361_s28 = sshll.u32 %s572_s15, 7 }
  0x2e   : > { %p692_p12 = por %p811_p10, %p34_p1  ;;  %s360_s29 = sshll.u32 %s148_s27, 3 }
  0x2f   : > { %s701_s4 = scalar_lea.hbm %s800_s0, %s361_s28  ;;  %s152_s22 = scalar_lea.vmem [#allocation2], %s360_s29 }
  0x30   : > { %s159_s25 = sshll.u32 %s152_s22, 4  ;;  %p703_p11 = pnand %p404_p6, %p36_p8  ;;  %s707_s25 = int_to_ptr.vmem [resolvable:$true] %s159_s25 }
  0x31   : > { %s149_s5 = scalar_lea.sflag [#allocation3], %s148_s27  ;;  %s472_s6 = scalar_lea.hbm %s701_s4, 128 }
  0x32   : > { %p473_p13 = scmp.ne.s32.totalorder %s701_s4, %s472_s6  ;;  %p474_p0 = pneg %p703_p11 }
  0x33   : > { %s477_s9 = scalar_lea.hbm %s800_s0, 256  ;;  %p478_p7 = scmp.lt.u32.totalorder %s701_s4, %s800_s0 }
  0x34   : > { %p475_p3 = pnand %p474_p0, %p473_p13  ;;  %p479_p9 = scmp.lt.u32.totalorder %s477_s9, %s472_s6 }
  0x35   : > { %p481_p1 = scmp.lt.u32.totalorder %s472_s6, %s701_s4 }
  0x36   : > { %p476_p5 = pneg %p475_p3  ;;  %p480_p2 = por %p479_p9, %p478_p7 }
  0x38   : > { %p482_p4 = por %p481_p1, %p480_p2 }
  0x3a   : > { %p483_p6 = pnand %p482_p4, %p476_p5 }
  0x3c   : > { %486 = shalt.err (!%p483_p6)
}
  0x3d   : > { %s487_s27 = scalar_lea.vmem %s707_s25, 128  ;;  %s577_s28 = smov [#allocation2]  }
  0x3e   : > { %p488_p8 = scmp.ne.s32.totalorder %s707_s25, %s487_s27  ;;  %s492_s29 = sshll.u32 %s577_s28, 4  ;;  %s493_s29 = int_to_ptr.vmem [resolvable:$false] %s492_s29 }
  0x3f   : > { %s494_s23 = scalar_lea.vmem %s493_s29, 256  ;;  %p495_p3 = scmp.lt.s32.totalorder %s707_s25, %s493_s29 }
  0x40   : > { %p490_p10 = pnand %p488_p8, %p474_p0  ;;  %p496_p7 = scmp.lt.s32.totalorder %s494_s23, %s487_s27 }
  0x42   : > { %p491_p13 = pneg %p490_p10  ;;  %p497_p9 = por %p496_p7, %p495_p3 }
  0x44   : > { %p498_p2 = pnand %p497_p9, %p491_p13 }
  0x46   : > { %501 = shalt.err (!%p498_p2)
}
  0x47   : > { %398 = dma.hbm_to_vmem [thread:$0]  (!%p703_p11), %s701_s4, 128, %s707_s25, %s149_s5  }
  0x48   : > { %p814_p5 = scmp.ne.s32.totalorder %s809_s20, 0 }
  0x49   : > { %s737_s30 = sand.u32 (!%p814_p5), 1, %s564_s13   ;;  %p815_p0 = scmp.ne.s32.totalorder (!%p814_p5), %s807_s18, 0 }
  0x4a   : > { %168 = sbr.rel (%p814_p5) target bundleno = 323 (0x143), region = 32  ;;  %s363_s22 = sshll.u32 (!%p814_p5), %s737_s30, 3 }
  0x4b   : > { %s171_s6 = scalar_lea.sflag (!%p814_p5), [#allocation3], %s737_s30  ;;  %s174_s7 = scalar_lea.vmem (!%p814_p5), [#allocation2], %s363_s22 }
  0x51   : > { %547 = dma.done.wait (%p815_p0), %s171_s6, 128  }
  0x52   : > { %549 = vsyncadd (%p815_p0), %s171_s6, 4294967168  ;;  %p816_p1 = scmp.eq.s32.totalorder %s622_s16, 0 }
  0x54   : > { %551 = dma.done.wait (%p816_p1), [#allocation6], 512   ;;  %p817_p11 = pmov %p816_p1 }
  0x55   : > { %v578_v0 = vmov 0.0   ;;  %vm579_vm0 = vmmov 0   ;;  %v204_v1 = vld [vmem:[#allocation5] sm:$0xff]  ;;  %v205_v2 = vld [vmem:[#allocation5 + $0x8] sm:$0xff]  ;;  %v206_v3 = vld [vmem:[#allocation5 + $0x10] sm:$0xff]  ;;  %vm217_vm1 = vcmask 261120  }
  0x56   : > { %553 = vsyncadd (%p817_p11), [#allocation6], 4294966784  ;;  %375 = vmatprep.subr.bf16.mxu0 %v578_v0  ;;  %379 = vmatprep.mubr.msk.bf16.mxu0 %vm579_vm0, %v578_v0  ;;  %v208_v4 = vpack.c.bf16 %v205_v2, %v204_v1  ;;  %v207_v5 = vld [vmem:[#allocation5 + $0x18] sm:$0xff]  ;;  %v366_v9 = vld [vmem:[%s802_s2] ss:$0 sm:$0xff]  ;;  %s369_s4 = sshll.u32 %s622_s16, 7 }
  0x57   : > { %v209_v6 = vpack.c.bf16 %v207_v5, %v206_v3  ;;  %v202_v7 = vld [vmem:[%s174_s7] sm:$0xff]  ;;  %s200_s25 = scalar_lea.vmem [#allocation7], %s363_s22  ;;  %s756_s9 = scalar_lea.hbm %s803_s3, %s369_s4 }
  0x58   : > { %376 = vmatpush3.bf16.msra.mxu0 %v208_v4  ;;  %v203_v8 = vpack.c.bf16 %v202_v7, %v202_v7  ;;  %s276_s26 = sshll.u32 %s200_s25, 4  ;;  %s263_s10 = scalar_lea.sflag [#allocation4], %s737_s30  ;;  %s758_s26 = int_to_ptr.vmem [resolvable:$true] %s276_s26 }
  0x59   : > { %377 = vmatprep.subr.bf16.mxu0 %v578_v0  ;;  %s502_s16 = scalar_lea.vmem %s758_s26, 128  ;;  %s580_s11 = smov [#allocation7]  }
  0x5a   : > { %p503_p4 = scmp.ne.s32.totalorder %s758_s26, %s502_s16  ;;  %s506_s27 = sshll.u32 %s580_s11, 4  ;;  %s507_s27 = int_to_ptr.vmem [resolvable:$false] %s506_s27 }
  0x5b   : > { %s508_s28 = scalar_lea.vmem %s507_s27, 256  ;;  %p509_p10 = scmp.lt.s32.totalorder %s758_s26, %s507_s27 }
  0x5c   : > { %378 = vmatpush3.bf16.msra.mxu0 %v209_v6  ;;  %p504_p6 = pnand %p503_p4, %p692_p12  ;;  %p510_p13 = scmp.lt.s32.totalorder %s508_s28, %s502_s16 }
  0x5e   : > { %p505_p8 = pneg %p504_p6  ;;  %p511_p3 = por %p510_p13, %p509_p10 }
  0x5f   : > { %380 = vmatmul.mubr.msk.bf16.vlgmr.msra.gmra.mrb[0].mxu0 %vm217_vm1, %v203_v8 }
  0x60   : > { %p512_p7 = pnand %p511_p3, %p505_p8 }
 0x132   : > { %v255_v10 = vpop.f32.mrb[0].mxu0 }
 0x133   : > { %v256_v11 = vadd.f32 %v366_v9, %v255_v10  ;;  %v381_v12 = vpop.f32.mrb[1].mxu0 }
 0x134   : > { %v258_v13 = vpop.f32.mrb[2].mxu0 }
 0x135   : > { %v382_v14 = vpop.f32.mrb[3].mxu0  ;;  %261 = vst.msk [vmem:[%s200_s25] sm:$0xff] %vm217_vm1, %v256_v11 }
 0x136   : > { %515 = shalt.err (!%p512_p7)
}
 0x137   : > { %s516_s29 = scalar_lea.hbm %s756_s9, 128  ;;  %s520_s22 = scalar_lea.hbm %s803_s3, 256 }
 0x138   : > { %p517_p9 = scmp.ne.s32.totalorder %s756_s9, %s516_s29  ;;  %p521_p0 = scmp.lt.u32.totalorder %s756_s9, %s803_s3 }
 0x139   : > { %p522_p1 = scmp.lt.u32.totalorder %s520_s22, %s516_s29  ;;  %p524_p4 = scmp.lt.u32.totalorder %s516_s29, %s756_s9 }
 0x13a   : > { %p518_p2 = pnand %p517_p9, %p692_p12 }
 0x13b   : > { %p523_p11 = por %p522_p1, %p521_p0 }
 0x13c   : > { %p519_p5 = pneg %p518_p2 }
 0x13d   : > { %p525_p6 = por %p524_p4, %p523_p11 }
 0x13f   : > { %p526_p8 = pnand %p525_p6, %p519_p5 }
 0x141   : > { %529 = shalt.err (!%p526_p8)
}
 0x142   : > { %389 = dma.vmem_to_hbm [thread:$0]  (%p692_p12), %s758_s26, 128, %s756_s9, %s263_s10  }
 0x143 PF: > { %s288_s18 = sand.u32 1, %s560_s12   ;;  %p818_p10 = scmp.ne.s32.totalorder %s808_s19, 0 }
 0x144   : > { %p819_p13 = scmp.ge.s32.totalorder %s572_s15, 2  ;;  %s289_s20 = scalar_lea.sflag [#allocation4], %s288_s18 }
 0x146   : > { %p400_p3 = pnand %p819_p13, %p818_p10 }
 0x148   : > { %555 = dma.done.wait (!%p400_p3), %s289_s20, 128  }
 0x149   : > { %557 = vsyncadd (!%p400_p3), %s289_s20, 4294967168  ;;  %p17_p7 = scmp.ge.s32.totalorder %s657_s24, 4   ;;  %s820_s12 = smov %s564_s13 }
 0x14a   : > { %s821_s13 = smov %s568_s14  ;;  %s822_s14 = smov %s688_s17 }
 0x14b   : > { %s823_s15 = smov %s657_s24  ;;  %19 = sbr.rel (!%p17_p7) target bundleno = 6 (0x6), region = 81 }
 0x152   :  { %294 = vsyncpa [#allocation3], 1 }
 0x153   :  { %296 = vsyncpa [#allocation3 + $0x1], 1 }
 0x154   :  { %297 = vsyncpa [#allocation6], 1 }
 0x155   :  { %298 = vsyncpa [#allocation4], 1 }
 0x156   :  { %300 = vsyncpa [#allocation4 + $0x1], 1 }

</bundles_post_ra>
